<compile_context>
chip_gen: v5e
topology: v5e:2x2
jax: 0.10.0
libtpu: 0.0.40
codegen_flags: <defaults>
</compile_context>

<pallas_src>
import math
import functools

import jax
import jax.numpy as jnp
from jax.experimental import pallas as pl
from jax.experimental.pallas import tpu as pltpu


def _round_up(x, m):
    return ((x + m - 1) // m) * m


def _linear_kernel(x_ref, w_ref, b_ref, o_ref, acc_ref):
    """One (tm, tn) output tile; K is the innermost ("arbitrary") grid axis."""
    k = pl.program_id(2)

    @pl.when(k == 0)
    def _():
        acc_ref[...] = jnp.zeros_like(acc_ref)

    # bf16 x bf16 -> f32 accumulation on the MXU.
    acc_ref[...] += jnp.dot(x_ref[...], w_ref[...],
                            preferred_element_type=jnp.float32)

    @pl.when(k == pl.num_programs(2) - 1)
    def _():
        # Bias add in f32 on the VPU, then cast to the output dtype.
        o_ref[...] = (acc_ref[...] + b_ref[...]).astype(o_ref.dtype)


@functools.partial(jax.jit, static_argnames=("tm", "tn", "tk"))
def softmax_classifier_forward(x, w_t, b, *, tm=256, tn=512, tk=512):
    """nn.Linear forward: o = x @ W.T + b.

    x:   [B, D] f32
    w_t: [D, C] f32 (weight pre-transposed, = W.T)
    b:   [C]    f32
    returns [B, C] f32
    """
    B, D = x.shape
    C = w_t.shape[1]

    # Tile sizes: shrink to the (padded) problem for small shapes while keeping
    # the (8, 128) sublane/lane constraint on every block's last two dims.
    tm = min(tm, _round_up(B, 8))
    tn = min(tn, _round_up(C, 128))
    tk = min(tk, _round_up(D, 128))

    Bp, Dp, Cp = _round_up(B, tm), _round_up(D, tk), _round_up(C, tn)

    # Zero-pad to lane-dense tiles; padded K rows/cols contribute 0 to the dot,
    # padded B rows / C cols are sliced off below.
    xp = jnp.pad(x, ((0, Bp - B), (0, Dp - D)))
    wp = jnp.pad(w_t, ((0, Dp - D), (0, Cp - C)))
    bp = jnp.pad(b, (0, Cp - C)).reshape(1, Cp)

    # Feed the MXU bf16 operands (fast path on v5e/v6e/v7x); accumulate in f32.
    x_bf = xp.astype(jnp.bfloat16)
    w_bf = wp.astype(jnp.bfloat16)

    grid = (Bp // tm, Cp // tn, Dp // tk)
    # VMEM budget (double-buffered, bf16 inputs / f32 out+acc) at the default
    # tile caps: 2*(256*512*2 + 512*512*2 + 256*512*4) + 256*512*4 ≈ 2.8 MiB,
    # comfortably inside the 32 MiB scoped default on every generation.

    out = pl.pallas_call(
        _linear_kernel,
        out_shape=jax.ShapeDtypeStruct((Bp, Cp), jnp.float32),
        grid=grid,
        in_specs=[
            pl.BlockSpec((tm, tk), lambda i, j, k: (i, k)),   # x tile
            pl.BlockSpec((tk, tn), lambda i, j, k: (k, j)),   # W.T tile
            pl.BlockSpec((1, tn), lambda i, j, k: (0, j)),    # bias tile
        ],
        out_specs=pl.BlockSpec((tm, tn), lambda i, j, k: (i, j)),
        scratch_shapes=[pltpu.VMEM((tm, tn), jnp.float32)],
        compiler_params=pltpu.CompilerParams(
            dimension_semantics=("parallel", "parallel", "arbitrary"),
        ),
    )(x_bf, w_bf, bp)

    return out[:B, :C]


if __name__ == "__main__":
    # Small shapes consistent with the module's forward: x [batch, input_dim].
    batch, input_dim, nclass = 8, 32, 16

    key = jax.random.PRNGKey(0)
    kx, kw, kb = jax.random.split(key, 3)

    # Deterministic init mirroring nn.Linear's default
    # uniform(-1/sqrt(input_dim), 1/sqrt(input_dim)).
    bound = 1.0 / math.sqrt(input_dim)
    W = jax.random.uniform(kw, (nclass, input_dim), jnp.float32, -bound, bound)
    b = jax.random.uniform(kb, (nclass,), jnp.float32, -bound, bound)
    x = jax.random.normal(kx, (batch, input_dim), jnp.float32)

    out = softmax_classifier_forward(x, W.T, b)
    out = jax.block_until_ready(out)

    # Reference 1: same bf16 operand cast + f32 accumulation (matches kernel math).
    ref_bf = (x.astype(jnp.bfloat16).astype(jnp.float32)
              @ W.T.astype(jnp.bfloat16).astype(jnp.float32)) + b
    # Reference 2: pure fp32 nn.Linear semantics (relaxed tol for bf16 operands).
    ref_f32 = x @ W.T + b

    assert out.shape == (batch, nclass)
    assert jnp.allclose(out, ref_bf, atol=1e-4, rtol=1e-4), "mismatch vs bf16 ref"
    assert jnp.allclose(out, ref_f32, atol=3e-2, rtol=3e-2), "mismatch vs fp32 ref"

    print("KERNEL_OK")
</pallas_src>

<mosaic_0001>
module attributes {stable_mosaic.version = 11 : i64} {
  func.func @_linear_kernel(%arg0: i32, %arg1: i32, %arg2: i32, %arg3: memref<8x128xbf16, #tpu.memory_space<vmem>>, %arg4: memref<128x128xbf16, #tpu.memory_space<vmem>>, %arg5: memref<1x128xf32, #tpu.memory_space<vmem>>, %arg6: memref<8x128xf32, #tpu.memory_space<vmem>>, %arg7: memref<8x128xf32, #tpu.memory_space<vmem>>) attributes {dimension_semantics = [#tpu.dimension_semantics<parallel>, #tpu.dimension_semantics<parallel>, #tpu.dimension_semantics<arbitrary>], iteration_bounds = array<i64: 1, 1, 1>, scalar_prefetch = 0 : i64, scratch_operands = 1 : i64, tpu.core_type = #tpu.core_type<tc>, window_params = [{transform_indices = @transform_0, window_bounds = array<i64: 8, 128>}, {transform_indices = @transform_1, window_bounds = array<i64: 128, 128>}, {transform_indices = @transform_2, window_bounds = array<i64: 1, 128>}, {transform_indices = @transform_3, window_bounds = array<i64: 8, 128>}]} {
    %c0_i32 = arith.constant 0 : i32
    %0 = arith.cmpi eq, %arg2, %c0_i32 : i32
    %1 = arith.extui %0 : i1 to i32
    %c0_i32_0 = arith.constant 0 : i32
    %2 = arith.cmpi ne, %1, %c0_i32_0 : i32
    scf.if %2 {
      %cst_10 = arith.constant 0.000000e+00 : f32
      %12 = vector.broadcast %cst_10 : f32 to vector<8x128xf32>
      %c0_11 = arith.constant 0 : index
      %c0_12 = arith.constant 0 : index
      %13 = vector.load %arg7[%c0_11, %c0_12] : memref<8x128xf32, #tpu.memory_space<vmem>>, vector<8x128xf32>
      tpu.vector_store %arg7[%c0_11, %c0_12], %12 {strides = array<i32>} : memref<8x128xf32, #tpu.memory_space<vmem>>, vector<8x128xf32>,
    } else {
    }
    %c0 = arith.constant 0 : index
    %c0_1 = arith.constant 0 : index
    %3 = vector.load %arg7[%c0, %c0_1] : memref<8x128xf32, #tpu.memory_space<vmem>>, vector<8x128xf32>
    %c0_2 = arith.constant 0 : index
    %c0_3 = arith.constant 0 : index
    %4 = vector.load %arg3[%c0_2, %c0_3] : memref<8x128xbf16, #tpu.memory_space<vmem>>, vector<8x128xbf16>
    %c0_4 = arith.constant 0 : index
    %c0_5 = arith.constant 0 : index
    %5 = vector.load %arg4[%c0_4, %c0_5] : memref<128x128xbf16, #tpu.memory_space<vmem>>, vector<128x128xbf16>
    %cst = arith.constant dense<0.000000e+00> : vector<8x128xf32>
    %6 = tpu.matmul %4, %5, %cst {dimension_numbers = #tpu.dot_dimension_numbers<[1], [0], [0], [1], [0, 0, 1, 1], [], []>} : vector<8x128xbf16>, vector<128x128xbf16>, vector<8x128xf32> -> vector<8x128xf32>
    %7 = arith.addf %3, %6 : vector<8x128xf32>
    %c0_6 = arith.constant 0 : index
    %c0_7 = arith.constant 0 : index
    %8 = vector.load %arg7[%c0_6, %c0_7] : memref<8x128xf32, #tpu.memory_space<vmem>>, vector<8x128xf32>
    tpu.vector_store %arg7[%c0_6, %c0_7], %7 {strides = array<i32>} : memref<8x128xf32, #tpu.memory_space<vmem>>, vector<8x128xf32>,
    %c0_i32_8 = arith.constant 0 : i32
    %9 = arith.cmpi eq, %arg2, %c0_i32_8 : i32
    %10 = arith.extui %9 : i1 to i32
    %c0_i32_9 = arith.constant 0 : i32
    %11 = arith.cmpi ne, %10, %c0_i32_9 : i32
    scf.if %11 {
      %c0_10 = arith.constant 0 : index
      %c0_11 = arith.constant 0 : index
      %12 = vector.load %arg7[%c0_10, %c0_11] : memref<8x128xf32, #tpu.memory_space<vmem>>, vector<8x128xf32>
      %c0_12 = arith.constant 0 : index
      %c0_13 = arith.constant 0 : index
      %13 = vector.load %arg5[%c0_12, %c0_13] : memref<1x128xf32, #tpu.memory_space<vmem>>, vector<1x128xf32>
      %14 = vector.broadcast %13 : vector<1x128xf32> to vector<8x128xf32>
      %15 = arith.addf %12, %14 : vector<8x128xf32>
      %c0_14 = arith.constant 0 : index
      %c0_15 = arith.constant 0 : index
      %16 = vector.load %arg6[%c0_14, %c0_15] : memref<8x128xf32, #tpu.memory_space<vmem>>, vector<8x128xf32>
      tpu.vector_store %arg6[%c0_14, %c0_15], %15 {strides = array<i32>} : memref<8x128xf32, #tpu.memory_space<vmem>>, vector<8x128xf32>,
    } else {
    }
    return
  }
  func.func @transform_0(%arg0: i32, %arg1: i32, %arg2: i32) -> (i32, i32) {
    %c0_i32 = arith.constant 0 : i32
    return %arg0, %arg2 : i32, i32
  }
  func.func @transform_1(%arg0: i32, %arg1: i32, %arg2: i32) -> (i32, i32) {
    %c0_i32 = arith.constant 0 : i32
    return %arg2, %arg1 : i32, i32
  }
  func.func @transform_2(%arg0: i32, %arg1: i32, %arg2: i32) -> (i32, i32) {
    %c0_i32 = arith.constant 0 : i32
    %c0_i32_0 = arith.constant 0 : i32
    return %c0_i32, %arg1 : i32, i32
  }
  func.func @transform_3(%arg0: i32, %arg1: i32, %arg2: i32) -> (i32, i32) {
    %c0_i32 = arith.constant 0 : i32
    return %arg0, %arg1 : i32, i32
  }
}

</mosaic_0001>

<bundles_post_ra>
// kernel: softmax_classifier_forward.1
= control target key start
LH: loop header
LB: loop body
LE: loop exit
PB: predicated region body
PF: predicated region fallthrough
CT: control target
= control target key end

     0   :  { %s249_s0 = inlined_call_operand.vmem [shape: bf16[8,128], index: 0, kind: input, shape index: {}]   ;;  %s250_s1 = inlined_call_operand.vmem [shape: bf16[128,128], index: 1, kind: input, shape index: {}]   ;;  %s251_s2 = inlined_call_operand.vmem [shape: f32[1,128], index: 2, kind: input, shape index: {}]   ;;  %s252_s3 = inlined_call_operand.hbm [shape: f32[8,128], index: 3, kind: output, shape index: {}]  }
   0x1   :  { %v166_v0 = vld [vmem:[%s250_s1 + $0x38] sm:$0xff]  ;;  %v165_v1 = vld [vmem:[%s250_s1 + $0x30] sm:$0xff] }
   0x2   :  { %86 = vmatpush.bf16.msra.mxu0 %v166_v0 }
   0x3   :  { %8 = vsyncpa [#allocation4], 0  ;;  %v164_v2 = vld [vmem:[%s250_s1 + $0x28] sm:$0xff]  ;;  %v163_v3 = vld [vmem:[%s250_s1 + $0x20] sm:$0xff]  ;;  %s195_s5 = smov [#allocation3]   ;;  %s118_s9 = sshll.u32 %s252_s3, 4  ;;  %s119_s9 = int_to_ptr.hbm [resolvable:$true] %s118_s9 }
   0x4   :  { %v162_v4 = vld [vmem:[%s250_s1 + $0x18] sm:$0xff]  ;;  %v161_v5 = vld [vmem:[%s250_s1 + $0x10] sm:$0xff]  ;;  %v160_v6 = vld [vmem:[%s250_s1 + $0x8] sm:$0xff]  ;;  %s116_s6 = sshll.u32 %s195_s5, 4  ;;  %s117_s6 = int_to_ptr.vmem [resolvable:$true] %s116_s6 }
   0x5   :  { %v159_v7 = vld [vmem:[%s250_s1] sm:$0xff] }
   0x6   :  { %87 = vmatpush.bf16.msra.mxu0 %v165_v1  ;;  %v21_v8 = vld [vmem:[%s249_s0] sm:$0xf] }
   0x7   :  { %v168_v9 = vld [vmem:[%s251_s2] ss:$0 sm:$0xff] }
   0xa   :  { %88 = vmatpush.bf16.msra.mxu0 %v164_v2 }
   0xe   :  { %89 = vmatpush.bf16.msra.mxu0 %v163_v3 }
  0x12   :  { %90 = vmatpush.bf16.msra.mxu0 %v162_v4 }
  0x16   :  { %91 = vmatpush.bf16.msra.mxu0 %v161_v5 }
  0x1a   :  { %92 = vmatpush.bf16.msra.mxu0 %v160_v6 }
  0x1e   :  { %93 = vmatpush.bf16.msra.mxu0 %v159_v7 }
  0x21   :  { %94 = vmatmul.bf16.vlgmr.msra.gmra.mxu0 %v21_v8 }
  0x9e   :  { %v95_v10 = vpop.f32.mrf.mxu0 }
  0x9f   :  { %v109_v11 = vadd.f32 %v168_v9, %v95_v10 }
  0xa1   :  { %110 = vst [vmem:[#allocation3] sm:$0xff] %v109_v11 }
  0xa2   :  { %121 = dma.vmem_to_hbm [thread:$0]  %s117_s6, 128, %s119_s9, [#allocation4]  }
  0xa6   :  { %v97_v12 = vpop.f32.mrf.mxu0 }
  0xa7   :  { %193 = dma.done.wait [#allocation4], 128  }
  0xa8   :  { %194 = vsyncadd [#allocation4], 4294967168 }
  0xa9   :  { %126 = vsyncpa [#allocation4], 1 }

</bundles_post_ra>
